<compile_context>
chip_gen: v7x
topology: tpu7x:2x2x1
jax: 0.10.0
libtpu: 0.0.40
codegen_flags: <defaults>
</compile_context>

<pallas_src>
import functools

import jax
import jax.numpy as jnp
from jax.experimental import pallas as pl
from jax.experimental.pallas import tpu as pltpu


# ---------------------------------------------------------------------------
# Parameter initialization (deterministic JAX mirror of he_orthogonal_init)
# ---------------------------------------------------------------------------
def _standardize(weight: jnp.ndarray) -> jnp.ndarray:
    """Normalize weight to mean 0 / var 1 (unbiased var, like torch.var_mean)."""
    eps = 1e-6
    axis = (0, 1) if weight.ndim == 3 else 1
    mean = jnp.mean(weight, axis=axis, keepdims=True)
    var = jnp.var(weight, axis=axis, keepdims=True, ddof=1)
    return (weight - mean) / jnp.sqrt(var + eps)


def he_orthogonal_init(key, shape):
    """Deterministic He-orthogonal init (orthogonal -> standardize -> scale)."""
    rows, cols = shape  # (out_features, in_features)
    transposed = rows < cols
    a_shape = (cols, rows) if transposed else (rows, cols)
    a = jax.random.normal(key, a_shape, dtype=jnp.float32)
    q, r = jnp.linalg.qr(a)
    q = q * jnp.sign(jnp.diagonal(r))[None, :]      # make decomposition unique
    w = q.T if transposed else q
    fan_in = cols
    return (_standardize(w) * (1.0 / fan_in) ** 0.5).astype(jnp.float32)


# ---------------------------------------------------------------------------
# Small helpers
# ---------------------------------------------------------------------------
def _cdiv(a, b):
    return (a + b - 1) // b


def _round_up(x, m):
    return _cdiv(x, m) * m


def _balanced_tile(extent, cap, align):
    """Full extent if it fits in one tile; else a balanced `align`-multiple.

    Prefers bumping to a 256-multiple (v6e/v7x MXU is 2x256x256) when that does
    not increase the total covered extent (no extra wasted rows/cols).
    """
    if extent <= cap:
        return extent
    n = _cdiv(extent, cap)
    t = min(cap, _round_up(_cdiv(extent, n), align))
    if align < 256:
        t256 = _round_up(t, 256)
        if t256 <= cap and _cdiv(extent, t256) * t256 <= _cdiv(extent, t) * t:
            t = t256
    return t


# ---------------------------------------------------------------------------
# Pallas kernel: tiled (M, N, K) matmul with an f32 VMEM accumulator.
# Residual (2x) and bias are pre-folded into w'/b' by prepare_dense_params.
# ---------------------------------------------------------------------------
def _dense_kernel(x_ref, w_ref, b_ref, o_ref, acc_ref, *,
                  mask_k, k_valid_last, compute_dtype):
    k = pl.program_id(2)
    nk = pl.num_programs(2)

    @pl.when(k == 0)
    def _init():
        # Bias folded into the accumulator init (saves an epilogue VPU add).
        acc_ref[...] = jnp.broadcast_to(b_ref[...], acc_ref.shape)

    x = x_ref[...]
    if mask_k:
        # K does not divide tk: zero the out-of-range K columns of the last
        # block so stale VMEM (possibly NaN) never reaches the contraction.
        valid = jnp.where(k == nk - 1, k_valid_last, x.shape[1])
        col = jax.lax.broadcasted_iota(jnp.int32, x.shape, 1)
        x = jnp.where(col < valid, x, jnp.zeros_like(x))
    # Optional bf16 cast happens in-kernel (hidden under the MXU) instead of an
    # extra HBM read/write pass over x in the wrapper.
    x = x.astype(compute_dtype)

    acc_ref[...] += jnp.dot(x, w_ref[...], preferred_element_type=jnp.float32)

    @pl.when(k == nk - 1)
    def _finalize():
        o_ref[...] = acc_ref[...].astype(o_ref.dtype)


# ---------------------------------------------------------------------------
# One-time parameter preprocessing (hoisted out of the per-call path).
# ---------------------------------------------------------------------------
def prepare_dense_params(weight, bias, *, residual=True, activation="identity",
                         use_bf16=False, tk_max=512):
    """Fold residual-Identity (act(y)+y == 2*y) and bias into the parameters,
    transpose W to (K, Nout), zero-pad the contracting dim to the K tile, and
    optionally cast to bf16.  Call once; the result is reused every forward."""
    if activation not in ("identity", None):
        # TODO(synk): non-Identity activations need an in-kernel epilogue
        # (act(y) + y) instead of the 2*W / 2*b constant fold.
        raise NotImplementedError("only activation_fn=nn.Identity() is supported")

    out_features, in_features = weight.shape
    if bias is None:
        bias = jnp.zeros((out_features,), jnp.float32)

    scale = 2.0 if residual else 1.0
    w_t = scale * weight.astype(jnp.float32).T               # (K, Nout)
    b2 = (scale * bias.astype(jnp.float32)).reshape(1, out_features)

    K = in_features
    tk = _balanced_tile(K, tk_max, 128)
    nk = _cdiv(K, tk)
    mask_k = (K % tk) != 0
    if nk * tk != K:
        # Zero-pad W along K once so padded rows contribute exactly 0.
        w_t = jnp.pad(w_t, ((0, nk * tk - K), (0, 0)))

    compute_dtype = jnp.bfloat16 if use_bf16 else jnp.float32
    return {
        "w": w_t.astype(compute_dtype),   # (nk*tk, Nout)
        "b": b2,                          # (1, Nout), f32
        "in_features": K,
        "out_features": out_features,
        "tk": tk,
        "nk": nk,
        "mask_k": mask_k,
        "k_valid_last": K - (nk - 1) * tk,
        "compute_dtype": compute_dtype,
    }


# ---------------------------------------------------------------------------
# Forward pass
# ---------------------------------------------------------------------------
def dense_forward(x, params, *, tm_max=1024, tn_max=512):
    """x: (B, N, M, in_features) -> (B, N, out_features, M)."""
    B, Nn, Mm, K = x.shape
    assert K == params["in_features"], (K, params["in_features"])
    w_t, b2 = params["w"], params["b"]
    Nout = params["out_features"]
    tk, nk = params["tk"], params["nk"]
    out_dtype = x.dtype

    x2d = x.reshape(B * Nn * Mm, K)          # contiguous reshape: no copy
    Mrows = x2d.shape[0]

    # ---- tile selection ----------------------------------------------------
    tm = _balanced_tile(Mrows, tm_max, 128)
    tn = _balanced_tile(Nout, tn_max, 128)
    grid_m = _cdiv(Mrows, tm)
    grid_n = _cdiv(Nout, tn)
    # Expose >= 2 parallel blocks so both of v7x's TensorCores get work.
    if grid_m * grid_n == 1 and Mrows >= 16:
        tm = _round_up(_cdiv(Mrows, 2), 8)
        grid_m = _cdiv(Mrows, tm)
    elif grid_m * grid_n == 1 and Nout >= 256:
        tn = _round_up(_cdiv(Nout, 2), 128)
        grid_n = _cdiv(Nout, tn)
    grid = (grid_m, grid_n, nk)

    # ---- pipeline depth / right-sized VMEM budget ---------------------------
    kbuf = 3 if nk >= 4 else 2               # deeper K-pipelining for deep-K layers
    x_bpe = x2d.dtype.itemsize
    w_bpe = w_t.dtype.itemsize
    o_bpe = jnp.dtype(out_dtype).itemsize
    vmem_need = (kbuf * (tm * tk * x_bpe + tk * tn * w_bpe)   # pipelined inputs
                 + 2 * tn * 4                                 # bias block
                 + 2 * tm * tn * o_bpe                        # output block
                 + tm * tn * 4)                               # f32 accumulator
    vmem_limit = int(min(32 * 1024 * 1024, max(4 * 1024 * 1024, 2 * vmem_need)))

    kernel = functools.partial(
        _dense_kernel,
        mask_k=params["mask_k"],
        k_valid_last=params["k_valid_last"],
        compute_dtype=params["compute_dtype"],
    )

    buf_kw = dict(pipeline_mode=pl.Buffered(kbuf)) if kbuf != 2 else {}
    in_specs = [
        pl.BlockSpec((tm, tk), lambda i, j, k: (i, k), **buf_kw),
        pl.BlockSpec((tk, tn), lambda i, j, k: (k, j), **buf_kw),
        pl.BlockSpec((1, tn), lambda i, j, k: (0, j)),
    ]

    cost = pl.CostEstimate(
        flops=2 * Mrows * Nout * (nk * tk),
        transcendentals=0,
        bytes_accessed=int(grid_n * Mrows * K * x_bpe      # x re-read per N tile
                           + grid_m * w_t.size * w_bpe     # W re-read per M tile
                           + grid_m * Nout * 4             # bias re-read per M tile
                           + Mrows * Nout * o_bpe),        # output written once
    )

    y2d = pl.pallas_call(
        kernel,
        out_shape=jax.ShapeDtypeStruct((Mrows, Nout), out_dtype),
        grid_spec=pltpu.PrefetchScalarGridSpec(
            num_scalar_prefetch=0,
            grid=grid,
            in_specs=in_specs,
            out_specs=pl.BlockSpec((tm, tn), lambda i, j, k: (i, j)),
            scratch_shapes=[pltpu.VMEM((tm, tn), jnp.float32)],
        ),
        compiler_params=pltpu.CompilerParams(
            dimension_semantics=("parallel", "parallel", "arbitrary"),
            vmem_limit_bytes=vmem_limit,
        ),
        cost_estimate=cost,
    )(x2d, w_t, b2)

    y = y2d.reshape(B, Nn, Mm, Nout)
    # Module returns x.transpose(2, -1): kept as XLA glue (layout plumbing);
    # fusing it in-kernel would emit Mm(=8)-wide masked stores.
    return jnp.swapaxes(y, 2, -1)


# ---------------------------------------------------------------------------
if __name__ == "__main__":
    B, Nn, Mm = 2, 4, 8
    in_features, out_features = 32, 64

    key = jax.random.PRNGKey(0)
    kx, kw = jax.random.split(key)

    # Parameters (Dense.__init__ / reset_parameters): He-orthogonal W, zero bias.
    weight = he_orthogonal_init(kw, (out_features, in_features))
    bias = jnp.zeros((out_features,), dtype=jnp.float32)
    x = jax.random.normal(kx, (B, Nn, Mm, in_features), dtype=jnp.float32)

    # ---- default path: f32 compute (parity with the PyTorch f32 Linear) ----
    params = prepare_dense_params(weight, bias)            # one-time prep
    out = jax.block_until_ready(dense_forward(x, params))
    assert out.shape == (B, Nn, out_features, Mm), out.shape

    y_ref = jnp.einsum("bnmk,ok->bnmo", x, weight,
                       precision=jax.lax.Precision.HIGHEST) + bias
    ref = jnp.swapaxes(y_ref + y_ref, 2, -1)
    # MXU f32 matmuls may internally use bf16 passes depending on generation /
    # default precision, so allow a modest tolerance against the exact-f32 ref.
    assert jnp.allclose(out, ref, atol=3e-2, rtol=3e-2), float(
        jnp.max(jnp.abs(out - ref)))

    # ---- optional bf16 MXU-native path (tight check vs matched rounding) ----
    params_bf16 = prepare_dense_params(weight, bias, use_bf16=True)
    out_bf16 = jax.block_until_ready(dense_forward(x, params_bf16))
    x_r = x.astype(jnp.bfloat16).astype(jnp.float32)
    w_r = (2.0 * weight.T).astype(jnp.bfloat16).astype(jnp.float32)
    y_bf = jnp.einsum("bnmk,ko->bnmo", x_r, w_r,
                      precision=jax.lax.Precision.HIGHEST) + 2.0 * bias
    ref_bf = jnp.swapaxes(y_bf, 2, -1)
    assert jnp.allclose(out_bf16, ref_bf, atol=2e-3, rtol=2e-3), float(
        jnp.max(jnp.abs(out_bf16 - ref_bf)))

    print("KERNEL_OK")
</pallas_src>

<mosaic_0001>
module attributes {stable_mosaic.version = 11 : i64} {
  func.func @_dense_kernel(%arg0: i32, %arg1: i32, %arg2: i32, %arg3: memref<32x32xf32, #tpu.memory_space<vmem>>, %arg4: memref<32x64xf32, #tpu.memory_space<vmem>>, %arg5: memref<1x64xf32, #tpu.memory_space<vmem>>, %arg6: memref<32x64xf32, #tpu.memory_space<vmem>>, %arg7: memref<32x64xf32, #tpu.memory_space<vmem>>) attributes {dimension_semantics = [#tpu.dimension_semantics<parallel>, #tpu.dimension_semantics<parallel>, #tpu.dimension_semantics<arbitrary>], iteration_bounds = array<i64: 2, 1, 1>, scalar_prefetch = 0 : i64, scratch_operands = 1 : i64, tpu.core_type = #tpu.core_type<tc>, window_params = [{transform_indices = @transform_0, window_bounds = array<i64: 32, 32>}, {transform_indices = @transform_1, window_bounds = array<i64: 32, 64>}, {transform_indices = @transform_2, window_bounds = array<i64: 1, 64>}, {transform_indices = @transform_3, window_bounds = array<i64: 32, 64>}]} {
    %c0_i32 = arith.constant 0 : i32
    %0 = arith.cmpi eq, %arg2, %c0_i32 : i32
    %1 = arith.extui %0 : i1 to i32
    %c0_i32_0 = arith.constant 0 : i32
    %2 = arith.cmpi ne, %1, %c0_i32_0 : i32
    scf.if %2 {
      %c0_10 = arith.constant 0 : index
      %c0_11 = arith.constant 0 : index
      %12 = vector.load %arg5[%c0_10, %c0_11] : memref<1x64xf32, #tpu.memory_space<vmem>>, vector<1x64xf32>
      %13 = vector.shape_cast %12 : vector<1x64xf32> to vector<1x64xf32>
      %14 = vector.broadcast %13 : vector<1x64xf32> to vector<32x64xf32>
      %c0_12 = arith.constant 0 : index
      %c0_13 = arith.constant 0 : index
      %15 = vector.load %arg7[%c0_12, %c0_13] : memref<32x64xf32, #tpu.memory_space<vmem>>, vector<32x64xf32>
      tpu.vector_store %arg7[%c0_12, %c0_13], %14 {strides = array<i32>} : memref<32x64xf32, #tpu.memory_space<vmem>>, vector<32x64xf32>,
    } else {
    }
    %c0 = arith.constant 0 : index
    %c0_1 = arith.constant 0 : index
    %3 = vector.load %arg3[%c0, %c0_1] : memref<32x32xf32, #tpu.memory_space<vmem>>, vector<32x32xf32>
    %c0_2 = arith.constant 0 : index
    %c0_3 = arith.constant 0 : index
    %4 = vector.load %arg7[%c0_2, %c0_3] : memref<32x64xf32, #tpu.memory_space<vmem>>, vector<32x64xf32>
    %c0_4 = arith.constant 0 : index
    %c0_5 = arith.constant 0 : index
    %5 = vector.load %arg4[%c0_4, %c0_5] : memref<32x64xf32, #tpu.memory_space<vmem>>, vector<32x64xf32>
    %cst = arith.constant dense<0.000000e+00> : vector<32x64xf32>
    %6 = tpu.matmul %3, %5, %cst {dimension_numbers = #tpu.dot_dimension_numbers<[1], [0], [0], [1], [0, 0, 1, 1], [], []>} : vector<32x32xf32>, vector<32x64xf32>, vector<32x64xf32> -> vector<32x64xf32>
    %7 = arith.addf %4, %6 : vector<32x64xf32>
    %c0_6 = arith.constant 0 : index
    %c0_7 = arith.constant 0 : index
    %8 = vector.load %arg7[%c0_6, %c0_7] : memref<32x64xf32, #tpu.memory_space<vmem>>, vector<32x64xf32>
    tpu.vector_store %arg7[%c0_6, %c0_7], %7 {strides = array<i32>} : memref<32x64xf32, #tpu.memory_space<vmem>>, vector<32x64xf32>,
    %c0_i32_8 = arith.constant 0 : i32
    %9 = arith.cmpi eq, %arg2, %c0_i32_8 : i32
    %10 = arith.extui %9 : i1 to i32
    %c0_i32_9 = arith.constant 0 : i32
    %11 = arith.cmpi ne, %10, %c0_i32_9 : i32
    scf.if %11 {
      %c0_10 = arith.constant 0 : index
      %c0_11 = arith.constant 0 : index
      %12 = vector.load %arg7[%c0_10, %c0_11] : memref<32x64xf32, #tpu.memory_space<vmem>>, vector<32x64xf32>
      %c0_12 = arith.constant 0 : index
      %c0_13 = arith.constant 0 : index
      %13 = vector.load %arg6[%c0_12, %c0_13] : memref<32x64xf32, #tpu.memory_space<vmem>>, vector<32x64xf32>
      tpu.vector_store %arg6[%c0_12, %c0_13], %12 {strides = array<i32>} : memref<32x64xf32, #tpu.memory_space<vmem>>, vector<32x64xf32>,
    } else {
    }
    return
  }
  func.func @transform_0(%arg0: i32, %arg1: i32, %arg2: i32) -> (i32, i32) {
    %c0_i32 = arith.constant 0 : i32
    return %arg0, %arg2 : i32, i32
  }
  func.func @transform_1(%arg0: i32, %arg1: i32, %arg2: i32) -> (i32, i32) {
    %c0_i32 = arith.constant 0 : i32
    return %arg2, %arg1 : i32, i32
  }
  func.func @transform_2(%arg0: i32, %arg1: i32, %arg2: i32) -> (i32, i32) {
    %c0_i32 = arith.constant 0 : i32
    %c0_i32_0 = arith.constant 0 : i32
    return %c0_i32, %arg1 : i32, i32
  }
  func.func @transform_3(%arg0: i32, %arg1: i32, %arg2: i32) -> (i32, i32) {
    %c0_i32 = arith.constant 0 : i32
    return %arg0, %arg1 : i32, i32
  }
}

</mosaic_0001>

<bundles_post_ra>
// kernel: tpu_custom_call.1
= control target key start
LH: loop header
LB: loop body
LE: loop exit
PB: predicated region body
PF: predicated region fallthrough
CT: control target
= control target key end

     0   :  { %8 = vsyncpa [#allocation4], 0  ;;  %s880_s0 = inlined_call_operand.vmem [shape: f32[64,32], index: 0, kind: input, shape index: {}]   ;;  %s881_s1 = inlined_call_operand.vmem [shape: f32[32,64], index: 1, kind: input, shape index: {}]   ;;  %s882_s2 = inlined_call_operand.vmem [shape: f32[1,64], index: 2, kind: input, shape index: {}]   ;;  %s883_s3 = inlined_call_operand.hbm [shape: f32[64,64], index: 3, kind: output, shape index: {}]  }
   0x1   :  { %10 = vsyncpa [#allocation4 + $0x1], 0  ;;  %s735_s12 = smov 0   ;;  %s737_s13 = smov 0  }
   0x2   :  { %s739_s14 = smov 0   ;;  %s741_s15 = smov 0  }
   0x3   :  { %s743_s16 = smov 0   ;;  %s745_s17 = smov 0  }
   0x4 LB: > { %s520_s18 = sadd.s32 4294967295, %s710_s17   ;;  %s521_s19 = sadd.s32 4294967294, %s710_s17   ;;  %s710_s17 = sphi %s745_s17, %s16_s17   ;;  %s706_s16 = sphi %s743_s16, %s890_s16   ;;  %s702_s15 = sphi %s741_s15, %s889_s15   ;;  %s698_s14 = sphi %s739_s14, %s888_s14   ;;  %s694_s13 = sphi %s737_s13, %s887_s13   ;;  %s690_s12 = sphi %s735_s12, %s886_s12  }
   0x5   : > { %s35_s20 = sadd.s32 1, %s706_s16  ;;  %s126_s21 = sadd.s32 1, %s698_s14 }
   0x6   : > { %p37_p0 = scmp.ge.s32.totalorder %s35_s20, 2  ;;  %p136_p1 = scmp.ne.s32.totalorder %s698_s14, %s694_s13 }
   0x7   : > { %p137_p2 = scmp.eq.s32.totalorder %s520_s18, 1  ;;  %p142_p3 = scmp.ne.s32.totalorder %s694_s13, %s690_s12 }
   0x8   : > { %s892_s20 = smov (%p37_p0, %s35_s20), 0  ;;  %p143_p5 = scmp.eq.s32.totalorder %s521_s19, 1 }
   0x9   : > { %p775_p4 = por %p137_p2, %p136_p1  ;;  %s121_s23 = ssub.s32 %s706_s16, %s892_s20 }
   0xa   : > { %p526_p6 = scmp.ge.s32.totalorder %s710_s17, 1  ;;  %p124_p7 = scmp.eq.s32.totalorder %s121_s23, 0 }
   0xb   : > { %p782_p8 = por %p143_p5, %p142_p3  ;;  %p191_p9 = scmp.lt.s32.totalorder %s710_s17, 3 }
   0xc   : > { %s788_s25 = scalar_select %p124_p7, %s698_s14, %s126_s21  }
   0xd   : > { %p192_p10 = pnand %p526_p6, %p191_p9 }
   0xe   : > { %v275_v0 = vld [vmem:[%s881_s1] sm:$0xff] (!%p192_p10)  ;;  %v276_v1 = vld [vmem:[%s881_s1 + $0x8] sm:$0xff] (!%p192_p10)  ;;  %v277_v2 = vld [vmem:[%s881_s1 + $0x10] sm:$0xff] (!%p192_p10)  ;;  %s528_s5 = sshll.u32 (!%p192_p10), %s702_s15, 2  ;;  %vm262_vm0 = vcmask (!%p192_p10), 523264   ;;  %vm279_vm1 = vcmask (!%p192_p10), 261120  }
   0xf   : > { %195 = sbr.rel (%p192_p10) target bundleno = 265 (0x109), region = 32  ;;  %v563_v3 = vpack.c.bf16 (!%p192_p10), %v276_v1, %v275_v0  ;;  %v278_v4 = vld [vmem:[%s881_s1 + $0x18] sm:$0xff] (!%p192_p10)  ;;  %p230_p11 = scmp.lt.s32.totalorder (!%p192_p10), %s528_s5, 7  ;;  %v530_v5 = vld [vmem:[%s882_s2] ss:$0 sm:$0xff] (!%p192_p10) }
  0x10   : > { %v567_v6 = vpack.c.bf16 (!%p192_p10), %v278_v4, %v277_v2  ;;  %264 = vst.msk [vmem:[#allocation2 + $0x8] sm:$0xff] (!%p192_p10), %vm262_vm0, %v530_v5  ;;  %263 = vst.msk [vmem:[#allocation2] sm:$0xff] (!%p192_p10), %vm262_vm0, %v530_v5  ;;  %s226_s21 = sand.u32 (!%p192_p10), 1, %s694_s13   ;;  %s540_s26 = sshll.u32 (!%p192_p10), %s702_s15, 9 }
  0x11   : > { %265 = vst.msk [vmem:[#allocation2 + $0x10] sm:$0xff] (!%p192_p10), %vm262_vm0, %v530_v5  ;;  %266 = vst.msk [vmem:[#allocation2 + $0x18] sm:$0xff] (!%p192_p10), %vm262_vm0, %v530_v5  ;;  %564 = vmatprep.subr.bf16.mxu0 (!%p192_p10), %v563_v3  ;;  %571 = vmatprep.subr.bf16.mxu1 (!%p192_p10), %v563_v3  ;;  %s527_s23 = sshll.u32 (!%p192_p10), %s226_s21, 5  ;;  %s824_s4 = scalar_lea.hbm (!%p192_p10), %s883_s3, %s540_s26 }
  0x12   : > { %566 = vmatpush3.bf16.msra.mxu0 (!%p192_p10), %v563_v3  ;;  %573 = vmatpush3.bf16.msra.mxu1 (!%p192_p10), %v563_v3  ;;  %s228_s27 = scalar_lea.vmem (!%p192_p10), [#allocation3], %s527_s23  ;;  %s834_s15 = scalar_lea.sflag (!%p192_p10), [#allocation4], %s226_s21 }
  0x13   : > { %568 = vmatprep.subr.bf16.mxu0 (!%p192_p10), %v567_v6  ;;  %572 = vmatprep.subr.bf16.mxu1 (!%p192_p10), %v567_v6  ;;  %s412_s28 = sshll.u32 (!%p192_p10), %s228_s27, 4  ;;  %s712_s6 = smov (!%p192_p10), [#allocation3]   ;;  %s826_s28 = int_to_ptr.vmem [resolvable:$true] %s412_s28 }
  0x14   : > { %s636_s7 = sshll.u32 (!%p192_p10), %s712_s6, 4  ;;  %s637_s7 = int_to_ptr.vmem [resolvable:$false] %s636_s7 }
  0x15   : > { %s638_s8 = scalar_lea.vmem (!%p192_p10), %s637_s7, 1024  ;;  %p639_p1 = scmp.lt.s32.totalorder (!%p192_p10), %s826_s28, %s637_s7 }
  0x16   : > { %s894_s5 = smov (!%p230_p11, %s528_s5), 7  ;;  %570 = vmatpush3.bf16.msra.mxu0 %v567_v6  ;;  %574 = vmatpush3.bf16.msra.mxu1 %v567_v6 }
  0x17   : > { %s529_s10 = sshll.u32 %s894_s5, 3  ;;  %v272_v11 = vld [vmem:[#allocation2 + $0x8] sm:$0xff]  ;;  %v271_v13 = vld [vmem:[#allocation2] sm:$0xff]  ;;  %s632_s5 = scalar_lea.vmem %s826_s28, 512 }
  0x18   : > { %s236_s19 = scalar_lea.vmem %s880_s0, %s529_s10  ;;  %v274_v12 = vld [vmem:[#allocation2 + $0x18] sm:$0xff]  ;;  %v273_v14 = vld [vmem:[#allocation2 + $0x10] sm:$0xff]  ;;  %p633_p12 = scmp.ne.s32.totalorder %s826_s28, %s632_s5 }
  0x19   : > { %v267_v7 = vld [vmem:[%s236_s19] sm:$0xff]  ;;  %v269_v8 = vld [vmem:[%s236_s19 + $0x10] sm:$0xff]  ;;  %v268_v9 = vld [vmem:[%s236_s19 + $0x8] sm:$0xff]  ;;  %p640_p2 = scmp.lt.s32.totalorder %s638_s8, %s632_s5 }
  0x1a   : > { %v270_v10 = vld [vmem:[%s236_s19 + $0x18] sm:$0xff]  ;;  %557 = vmatprep.mubr.msk.f32.mxu0 %vm279_vm1, %v267_v7  ;;  %560 = vmatprep.mubr.msk.f32.mxu1 %vm279_vm1, %v269_v8  ;;  %p634_p13 = pnand %p633_p12, %p775_p4 }
  0x1b   : > { %558 = vmatmul.mubr.msk.f32.vlgmr.msra.gmra.mrb[0].mxu0 %vm279_vm1, %v268_v9  ;;  %561 = vmatmul.mubr.msk.f32.vlgmr.msra.gmra.mrb[0].mxu1 %vm279_vm1, %v270_v10  ;;  %p641_p3 = por %p640_p2, %p639_p1 }
  0x1c   : > { %p635_p0 = pneg %p634_p13 }
  0x1e   : > { %p642_p5 = pnand %p641_p3, %p635_p0 }
  0xee   : > { %v559_v15 = vpop.f32.mrb[0].mxu0  ;;  %v562_v16 = vpop.f32.mrb[0].mxu1 }
  0xef   : > { %v378_v17 = vadd.f32 %v559_v15, %v272_v11  ;;  %v380_v18 = vadd.f32 %v562_v16, %v274_v12  ;;  %v358_v19 = vpop.f32.mrb[1].mxu0  ;;  %v368_v20 = vpop.f32.mrb[1].mxu1 }
  0xf0   : > { %v377_v21 = vadd.f32 %v358_v19, %v271_v13  ;;  %v379_v22 = vadd.f32 %v368_v20, %v273_v14 }
  0xf1   : > { %383 = vst.msk [vmem:[#allocation2 + $0x8] sm:$0xff] %vm262_vm0, %v378_v17  ;;  %385 = vst.msk [vmem:[#allocation2 + $0x18] sm:$0xff] %vm262_vm0, %v380_v18 }
  0xf2   : > { %382 = vst.msk [vmem:[#allocation2] sm:$0xff] %vm262_vm0, %v377_v21  ;;  %384 = vst.msk [vmem:[#allocation2 + $0x10] sm:$0xff] %vm262_vm0, %v379_v22 }
  0xf8   : > { %v390_v23 = vld [vmem:[#allocation2 + $0x8] sm:$0xff]  ;;  %v392_v24 = vld [vmem:[#allocation2 + $0x18] sm:$0xff] }
  0xf9   : > { %v389_v25 = vld [vmem:[#allocation2] sm:$0xff]  ;;  %v391_v26 = vld [vmem:[#allocation2 + $0x10] sm:$0xff]  ;;  %394 = vst.msk [vmem:[%s228_s27 + $0x8] sm:$0xff] %vm262_vm0, %v390_v23  ;;  %396 = vst.msk [vmem:[%s228_s27 + $0x18] sm:$0xff] %vm262_vm0, %v392_v24 }
  0xfa   : > { %393 = vst.msk [vmem:[%s228_s27] sm:$0xff] %vm262_vm0, %v389_v25  ;;  %395 = vst.msk [vmem:[%s228_s27 + $0x10] sm:$0xff] %vm262_vm0, %v391_v26 }
  0xfb   : > { %645 = shalt.err (!%p642_p5)
}
  0xfc   : > { %s646_s9 = scalar_lea.hbm %s824_s4, 512  ;;  %s650_s18 = scalar_lea.hbm %s883_s3, 1024 }
  0xfd   : > { %p647_p6 = scmp.ne.s32.totalorder %s824_s4, %s646_s9  ;;  %p651_p10 = scmp.lt.u32.totalorder %s824_s4, %s883_s3 }
  0xfe   : > { %p652_p11 = scmp.lt.u32.totalorder %s650_s18, %s646_s9  ;;  %p654_p13 = scmp.lt.u32.totalorder %s646_s9, %s824_s4 }
  0xff   : > { %p648_p7 = pnand %p647_p6, %p775_p4 }
 0x100   : > { %p653_p12 = por %p652_p11, %p651_p10 }
 0x101   : > { %p649_p9 = pneg %p648_p7 }
 0x102   : > { %p655_p0 = por %p654_p13, %p653_p12 }
 0x104   : > { %p656_p1 = pnand %p655_p0, %p649_p9 }
 0x106   : > { %659 = shalt.err (!%p656_p1)
}
 0x107   : > { %s713_s23 = smov 128   ;;  %s714_s26 = smov 8  }
 0x108   : > { %575 = dma.vmem_to_hbm [thread:$0]  (%p775_p4), %s826_s28, 512, %s824_s4, %s834_s15, %s713_s23, %s713_s23, %s714_s26  }
 0x109 PF: > { %p581_p2 = scmp.ge.s32.totalorder %s710_s17, 2  ;;  %s427_s27 = sand.u32 1, %s690_s12  }
 0x10a   : > { %s428_s29 = scalar_lea.sflag [#allocation4], %s427_s27 }
 0x10b   : > { %p578_p3 = pnand %p581_p2, %p782_p8 }
 0x10d   : > { %685 = dma.done.wait (!%p578_p3), %s428_s29, 512  }
 0x10e   : > { %687 = vsyncadd (!%p578_p3), %s428_s29, 4294966784  ;;  %s16_s17 = sadd.s32 1, %s710_s17   ;;  %s886_s12 = smov %s694_s13 }
 0x10f   : > { %p13_p5 = scmp.ge.s32.totalorder %s16_s17, 4   ;;  %s887_s13 = smov %s698_s14 }
 0x110   : > { %s888_s14 = smov %s788_s25  ;;  %s889_s15 = smov %s706_s16 }
 0x111   : > { %s890_s16 = smov %s892_s20  ;;  %15 = sbr.rel (!%p13_p5) target bundleno = 4 (0x4), region = 81 }
 0x118   :  { %433 = vsyncpa [#allocation4], 1 }
 0x119   :  { %435 = vsyncpa [#allocation4 + $0x1], 1 }

</bundles_post_ra>
